<compile_context>
chip_gen: v5e
topology: v5e:2x2
jax: 0.10.0
libtpu: 0.0.40
codegen_flags: <defaults>
</compile_context>

<pallas_src>
import math

import jax
import jax.numpy as jnp
from jax.experimental import pallas as pl
from jax.experimental.pallas import tpu as pltpu

# Small, module-consistent shapes.
BATCH = 2
SEQ = 8
D_MODEL = 32
N_HEADS = 4
HEAD_DIM = D_MODEL // N_HEADS
D_FF = 4 * D_MODEL  # 128
EPS = 1e-5          # nn.LayerNorm default
VECW = 256          # lane width of the packed bias/LayerNorm slab (2 lane tiles)


def _layernorm(v, g, b):
    mu = jnp.mean(v, axis=-1, keepdims=True)
    var = jnp.mean((v - mu) ** 2, axis=-1, keepdims=True)
    return (v - mu) * jax.lax.rsqrt(var + EPS) * g + b


def encoder_layer_kernel(x_ref, wqkvo_ref, w1_ref, w2_ref, vec_ref, out_ref):
    H, E, D, F, B, L = N_HEADS, HEAD_DIM, D_MODEL, D_FF, BATCH, SEQ

    x = x_ref[...]                                   # (B*L, D) f32

    # vector slab rows: [proj_bias(192) | bo | b1 | b2 | g1 | be1 | g2 | be2]
    pbias = vec_ref[0:1, 0:2 * D + H * D]            # (1, 192)
    bo = vec_ref[1:2, 0:D]
    b1 = vec_ref[2:3, 0:F]
    b2 = vec_ref[3:4, 0:D]
    g1 = vec_ref[4:5, 0:D]
    be1 = vec_ref[5:6, 0:D]
    g2 = vec_ref[6:7, 0:D]
    be2 = vec_ref[7:8, 0:D]

    # ---- fused projection: ONE dense matmul producing [q | k | v'] -----------
    # v'_h = v_h @ Wo_h^T (Wo folded host-side); softmax scale folded into Wq/bq.
    proj = jnp.dot(x, wqkvo_ref[...],
                   preferred_element_type=jnp.float32) + pbias   # (BL, 2D + H*D)
    q = proj[:, 0:D]                                 # (BL, H*E)  head-major lanes
    k = proj[:, D:2 * D]                             # (BL, H*E)
    vp = proj[:, 2 * D:2 * D + H * D]                # (BL, H*D)

    # ---- attention: batch handled as a dot_general batch dim (no mask) -------
    # BL=16 -> (B=2, L=8) is a pure sublane regroup (split at the 8-row tile).
    ctx = None
    for h in range(H):
        qh = q[:, h * E:(h + 1) * E].reshape(B, L, E)
        kh = k[:, h * E:(h + 1) * E].reshape(B, L, E)
        vh = vp[:, h * D:(h + 1) * D].reshape(B, L, D)
        s = jnp.einsum("ble,bse->bls", qh, kh,
                       preferred_element_type=jnp.float32)       # (B, L, L)
        s = s - jnp.max(s, axis=-1, keepdims=True)
        p = jnp.exp(s)
        p = p / jnp.sum(p, axis=-1, keepdims=True)               # exact softmax
        part = jnp.einsum("bls,bsd->bld", p, vh,
                          preferred_element_type=jnp.float32)    # (B, L, D)
        ctx = part if ctx is None else ctx + part
    new_x = ctx.reshape(B * L, D) + bo               # attention output + bo

    # residual + norm1   (dropout == identity in eval mode)
    xn = _layernorm(x + new_x, g1, be1)

    # ---- pointwise FFN (Conv1d kernel_size=1 == per-position Linear) ---------
    y = jnp.dot(xn, w1_ref[...], preferred_element_type=jnp.float32) + b1
    y = jnp.maximum(y, 0.0)  # activation='relu'
    y = jnp.dot(y, w2_ref[...], preferred_element_type=jnp.float32) + b2

    out_ref[...] = _layernorm(xn + y, g2, be2).astype(out_ref.dtype)


# ----------------------------- parameters -----------------------------------
def make_params(key):
    """PyTorch-layout parameters (nn.Linear / Conv1d(k=1) / LayerNorm)."""
    ks = jax.random.split(key, 12)
    sd = 1.0 / math.sqrt(D_MODEL)
    sf = 1.0 / math.sqrt(D_FF)

    def u(k, shape, s):
        return jax.random.uniform(k, shape, jnp.float32, -s, s)

    return {
        "wq": u(ks[0], (D_MODEL, D_MODEL), sd), "bq": u(ks[1], (D_MODEL,), sd),
        "wk": u(ks[2], (D_MODEL, D_MODEL), sd), "bk": u(ks[3], (D_MODEL,), sd),
        "wv": u(ks[4], (D_MODEL, D_MODEL), sd), "bv": u(ks[5], (D_MODEL,), sd),
        "wo": u(ks[6], (D_MODEL, D_MODEL), sd), "bo": u(ks[7], (D_MODEL,), sd),
        "g1": jnp.ones((D_MODEL,), jnp.float32),
        "be1": jnp.zeros((D_MODEL,), jnp.float32),
        "g2": jnp.ones((D_MODEL,), jnp.float32),
        "be2": jnp.zeros((D_MODEL,), jnp.float32),
        # conv1: (d_ff, d_model, 1) squeezed; conv2: (d_model, d_ff, 1) squeezed
        "w1": u(ks[8], (D_FF, D_MODEL), sd), "b1": u(ks[9], (D_FF,), sd),
        "w2": u(ks[10], (D_MODEL, D_FF), sf), "b2": u(ks[11], (D_MODEL,), sf),
    }


def _row(v):
    v = jnp.asarray(v, jnp.float32).reshape(-1)
    return jnp.pad(v, (0, VECW - v.shape[0]))


def pack_params(p):
    """Host-side pre-transpose / fuse / pack into 4 kernel weight operands."""
    H, E, D = N_HEADS, HEAD_DIM, D_MODEL
    scale = 1.0 / math.sqrt(E)

    wq_t = p["wq"].T * scale          # fold softmax scale into Wq / bq
    bq_s = p["bq"] * scale
    wk_t = p["wk"].T
    wv_t = p["wv"].T
    wo_t = p["wo"].T                  # (D, D)

    # Fold Wo into Wv per head:  v'_h = x @ Wvo_h + bvo_h  (= v_h @ Wo_h^T)
    wvo_blocks, bvo_blocks = [], []
    for h in range(H):
        wo_blk = wo_t[h * E:(h + 1) * E, :]                       # (E, D)
        wvo_blocks.append(wv_t[:, h * E:(h + 1) * E] @ wo_blk)    # (D, D)
        bvo_blocks.append(p["bv"][h * E:(h + 1) * E] @ wo_blk)    # (D,)

    wqkvo = jnp.concatenate([wq_t, wk_t] + wvo_blocks, axis=1)    # (D, 2D + H*D)
    pbias = jnp.concatenate([bq_s, p["bk"]] + bvo_blocks)         # (2D + H*D,)

    w1_t = p["w1"].T                                              # (D, D_FF)
    w2_t = p["w2"].T                                              # (D_FF, D)

    vecs = jnp.stack([_row(pbias), _row(p["bo"]), _row(p["b1"]), _row(p["b2"]),
                      _row(p["g1"]), _row(p["be1"]),
                      _row(p["g2"]), _row(p["be2"])], axis=0)     # (8, 256)

    return {"wqkvo": wqkvo, "w1_t": w1_t, "w2_t": w2_t, "vecs": vecs}


# ------------------------------- wrapper -------------------------------------
def _full_spec(a):
    nd = a.ndim
    return pl.BlockSpec(a.shape, lambda i: (0,) * nd)


@jax.jit
def encoder_layer(x, packed):
    B, L, D = x.shape
    x2 = x.reshape(B * L, D)          # free wrapper-side flatten: one slab, one block

    operands = [x2, packed["wqkvo"], packed["w1_t"], packed["w2_t"], packed["vecs"]]

    out2 = pl.pallas_call(
        encoder_layer_kernel,
        out_shape=jax.ShapeDtypeStruct((B * L, D), jnp.float32),
        grid=(1,),                                     # single grid step
        in_specs=[_full_spec(a) for a in operands],
        out_specs=pl.BlockSpec((B * L, D), lambda i: (0, 0)),
        compiler_params=pltpu.CompilerParams(dimension_semantics=("arbitrary",)),
    )(*operands)

    # FullAttention(output_attention=False) returns attn=None
    return out2.reshape(B, L, D), None


# ------------------------------ reference ------------------------------------
def encoder_layer_ref(x, p):
    """Pure-JAX reference with identical (eval-mode) semantics."""
    def ln(v, g, b):
        mu = jnp.mean(v, -1, keepdims=True)
        var = jnp.mean((v - mu) ** 2, -1, keepdims=True)
        return (v - mu) / jnp.sqrt(var + EPS) * g + b

    q = x @ p["wq"].T + p["bq"]
    k = x @ p["wk"].T + p["bk"]
    v = x @ p["wv"].T + p["bv"]
    B, L, D = x.shape
    qh = q.reshape(B, L, N_HEADS, HEAD_DIM)
    kh = k.reshape(B, L, N_HEADS, HEAD_DIM)
    vh = v.reshape(B, L, N_HEADS, HEAD_DIM)
    s = jnp.einsum("blhe,bshe->bhls", qh, kh) / math.sqrt(HEAD_DIM)
    a = jax.nn.softmax(s, axis=-1)
    ctx = jnp.einsum("bhls,bshd->blhd", a, vh).reshape(B, L, D)
    new_x = ctx @ p["wo"].T + p["bo"]
    xn = ln(x + new_x, p["g1"], p["be1"])
    y = jnp.maximum(xn @ p["w1"].T + p["b1"], 0.0)
    y = y @ p["w2"].T + p["b2"]
    return ln(xn + y, p["g2"], p["be2"])


if __name__ == "__main__":
    key = jax.random.PRNGKey(0)
    kx, kp = jax.random.split(key)
    x = jax.random.normal(kx, (BATCH, SEQ, D_MODEL), jnp.float32)
    params = make_params(kp)
    packed = pack_params(params)

    out, attn = encoder_layer(x, packed)
    out = jax.block_until_ready(out)

    ref = encoder_layer_ref(x, params)
    assert out.shape == (BATCH, SEQ, D_MODEL)
    assert attn is None
    assert jnp.allclose(out, ref, rtol=1e-4, atol=1e-4), "mismatch vs reference"
    # TODO(synk): dropout omitted (identity in eval mode); attn output is None
    # because FullAttention defaults to output_attention=False.
    print("KERNEL_OK")
</pallas_src>

<mosaic_0001>
module attributes {stable_mosaic.version = 11 : i64} {
  func.func @encoder_layer_kernel(%arg0: i32, %arg1: memref<16x32xf32, #tpu.memory_space<vmem>>, %arg2: memref<32x192xf32, #tpu.memory_space<vmem>>, %arg3: memref<32x128xf32, #tpu.memory_space<vmem>>, %arg4: memref<128x32xf32, #tpu.memory_space<vmem>>, %arg5: memref<8x256xf32, #tpu.memory_space<vmem>>, %arg6: memref<16x32xf32, #tpu.memory_space<vmem>>) attributes {dimension_semantics = [#tpu.dimension_semantics<arbitrary>], iteration_bounds = array<i64: 1>, scalar_prefetch = 0 : i64, scratch_operands = 0 : i64, tpu.core_type = #tpu.core_type<tc>, window_params = [{pipeline_mode = #tpu.pipeline_mode<synchronous>, transform_indices = @transform_0, window_bounds = array<i64: 16, 32>}, {pipeline_mode = #tpu.pipeline_mode<synchronous>, transform_indices = @transform_1, window_bounds = array<i64: 32, 192>}, {pipeline_mode = #tpu.pipeline_mode<synchronous>, transform_indices = @transform_2, window_bounds = array<i64: 32, 128>}, {pipeline_mode = #tpu.pipeline_mode<synchronous>, transform_indices = @transform_3, window_bounds = array<i64: 128, 32>}, {pipeline_mode = #tpu.pipeline_mode<synchronous>, transform_indices = @transform_4, window_bounds = array<i64: 8, 256>}, {pipeline_mode = #tpu.pipeline_mode<synchronous>, transform_indices = @transform_5, window_bounds = array<i64: 16, 32>}]} {
    %c0 = arith.constant 0 : index
    %c0_0 = arith.constant 0 : index
    %0 = vector.load %arg1[%c0, %c0_0] : memref<16x32xf32, #tpu.memory_space<vmem>>, vector<16x32xf32>
    %c0_1 = arith.constant 0 : index
    %c0_2 = arith.constant 0 : index
    %1 = vector.load %arg5[%c0_1, %c0_2] : memref<8x256xf32, #tpu.memory_space<vmem>>, vector<1x192xf32>
    %c1 = arith.constant 1 : index
    %c0_3 = arith.constant 0 : index
    %2 = vector.load %arg5[%c1, %c0_3] : memref<8x256xf32, #tpu.memory_space<vmem>>, vector<1x32xf32>
    %c2 = arith.constant 2 : index
    %c0_4 = arith.constant 0 : index
    %3 = vector.load %arg5[%c2, %c0_4] : memref<8x256xf32, #tpu.memory_space<vmem>>, vector<1x128xf32>
    %c3 = arith.constant 3 : index
    %c0_5 = arith.constant 0 : index
    %4 = vector.load %arg5[%c3, %c0_5] : memref<8x256xf32, #tpu.memory_space<vmem>>, vector<1x32xf32>
    %c4 = arith.constant 4 : index
    %c0_6 = arith.constant 0 : index
    %5 = vector.load %arg5[%c4, %c0_6] : memref<8x256xf32, #tpu.memory_space<vmem>>, vector<1x32xf32>
    %c5 = arith.constant 5 : index
    %c0_7 = arith.constant 0 : index
    %6 = vector.load %arg5[%c5, %c0_7] : memref<8x256xf32, #tpu.memory_space<vmem>>, vector<1x32xf32>
    %c6 = arith.constant 6 : index
    %c0_8 = arith.constant 0 : index
    %7 = vector.load %arg5[%c6, %c0_8] : memref<8x256xf32, #tpu.memory_space<vmem>>, vector<1x32xf32>
    %c7 = arith.constant 7 : index
    %c0_9 = arith.constant 0 : index
    %8 = vector.load %arg5[%c7, %c0_9] : memref<8x256xf32, #tpu.memory_space<vmem>>, vector<1x32xf32>
    %c0_10 = arith.constant 0 : index
    %c0_11 = arith.constant 0 : index
    %9 = vector.load %arg2[%c0_10, %c0_11] : memref<32x192xf32, #tpu.memory_space<vmem>>, vector<32x192xf32>
    %cst = arith.constant dense<0.000000e+00> : vector<16x192xf32>
    %10 = tpu.matmul %0, %9, %cst {dimension_numbers = #tpu.dot_dimension_numbers<[1], [0], [0], [1], [0, 0, 1, 1], [], []>} : vector<16x32xf32>, vector<32x192xf32>, vector<16x192xf32> -> vector<16x192xf32>
    %11 = vector.broadcast %1 : vector<1x192xf32> to vector<16x192xf32>
    %12 = arith.addf %10, %11 : vector<16x192xf32>
    %13 = vector.extract_strided_slice %12 {offsets = [0, 0], sizes = [16, 32], strides = [1, 1]} : vector<16x192xf32> to vector<16x32xf32>
    %14 = vector.extract_strided_slice %12 {offsets = [0, 32], sizes = [16, 32], strides = [1, 1]} : vector<16x192xf32> to vector<16x32xf32>
    %15 = vector.extract_strided_slice %12 {offsets = [0, 64], sizes = [16, 128], strides = [1, 1]} : vector<16x192xf32> to vector<16x128xf32>
    %16 = vector.extract_strided_slice %13 {offsets = [0, 0], sizes = [16, 8], strides = [1, 1]} : vector<16x32xf32> to vector<16x8xf32>
    %17 = vector.shape_cast %16 : vector<16x8xf32> to vector<2x8x8xf32>
    %18 = vector.extract_strided_slice %14 {offsets = [0, 0], sizes = [16, 8], strides = [1, 1]} : vector<16x32xf32> to vector<16x8xf32>
    %19 = vector.shape_cast %18 : vector<16x8xf32> to vector<2x8x8xf32>
    %20 = vector.extract_strided_slice %15 {offsets = [0, 0], sizes = [16, 32], strides = [1, 1]} : vector<16x128xf32> to vector<16x32xf32>
    %21 = vector.shape_cast %20 : vector<16x32xf32> to vector<2x8x32xf32>
    "tpu.trace_start"() <{level = 10 : i32, message = "ble,bse->bls"}> : () -> ()
    %cst_12 = arith.constant dense<0.000000e+00> : vector<2x8x8xf32>
    %22 = tpu.matmul %17, %19, %cst_12 {dimension_numbers = #tpu.dot_dimension_numbers<[2], [2], [1], [1], [0, 0, 0, 1, 1, 1], [0], [0]>} : vector<2x8x8xf32>, vector<2x8x8xf32>, vector<2x8x8xf32> -> vector<2x8x8xf32>
    "tpu.trace_stop"() : () -> ()
    %cst_13 = arith.constant dense<0xFF800000> : vector<2x8xf32>
    %23 = vector.multi_reduction <maximumf>, %22, %cst_13 [2] : vector<2x8x8xf32> to vector<2x8xf32>
    %24 = vector.shape_cast %23 : vector<2x8xf32> to vector<2x8x1xf32>
    %25 = vector.broadcast %24 : vector<2x8x1xf32> to vector<2x8x8xf32>
    %26 = arith.subf %22, %25 : vector<2x8x8xf32>
    %27 = math.exp %26 : vector<2x8x8xf32>
    %cst_14 = arith.constant dense<0.000000e+00> : vector<2x8xf32>
    %28 = vector.multi_reduction <add>, %27, %cst_14 [2] : vector<2x8x8xf32> to vector<2x8xf32>
    %29 = vector.shape_cast %28 : vector<2x8xf32> to vector<2x8x1xf32>
    %30 = vector.broadcast %29 : vector<2x8x1xf32> to vector<2x8x8xf32>
    %31 = arith.divf %27, %30 : vector<2x8x8xf32>
    "tpu.trace_start"() <{level = 10 : i32, message = "bls,bsd->bld"}> : () -> ()
    %cst_15 = arith.constant dense<0.000000e+00> : vector<2x8x32xf32>
    %32 = tpu.matmul %31, %21, %cst_15 {dimension_numbers = #tpu.dot_dimension_numbers<[2], [1], [1], [2], [0, 0, 0, 1, 1, 2], [0], [0]>} : vector<2x8x8xf32>, vector<2x8x32xf32>, vector<2x8x32xf32> -> vector<2x8x32xf32>
    "tpu.trace_stop"() : () -> ()
    %33 = vector.extract_strided_slice %13 {offsets = [0, 8], sizes = [16, 8], strides = [1, 1]} : vector<16x32xf32> to vector<16x8xf32>
    %34 = vector.shape_cast %33 : vector<16x8xf32> to vector<2x8x8xf32>
    %35 = vector.extract_strided_slice %14 {offsets = [0, 8], sizes = [16, 8], strides = [1, 1]} : vector<16x32xf32> to vector<16x8xf32>
    %36 = vector.shape_cast %35 : vector<16x8xf32> to vector<2x8x8xf32>
    %37 = vector.extract_strided_slice %15 {offsets = [0, 32], sizes = [16, 32], strides = [1, 1]} : vector<16x128xf32> to vector<16x32xf32>
    %38 = vector.shape_cast %37 : vector<16x32xf32> to vector<2x8x32xf32>
    "tpu.trace_start"() <{level = 10 : i32, message = "ble,bse->bls"}> : () -> ()
    %cst_16 = arith.constant dense<0.000000e+00> : vector<2x8x8xf32>
    %39 = tpu.matmul %34, %36, %cst_16 {dimension_numbers = #tpu.dot_dimension_numbers<[2], [2], [1], [1], [0, 0, 0, 1, 1, 1], [0], [0]>} : vector<2x8x8xf32>, vector<2x8x8xf32>, vector<2x8x8xf32> -> vector<2x8x8xf32>
    "tpu.trace_stop"() : () -> ()
    %cst_17 = arith.constant dense<0xFF800000> : vector<2x8xf32>
    %40 = vector.multi_reduction <maximumf>, %39, %cst_17 [2] : vector<2x8x8xf32> to vector<2x8xf32>
    %41 = vector.shape_cast %40 : vector<2x8xf32> to vector<2x8x1xf32>
    %42 = vector.broadcast %41 : vector<2x8x1xf32> to vector<2x8x8xf32>
    %43 = arith.subf %39, %42 : vector<2x8x8xf32>
    %44 = math.exp %43 : vector<2x8x8xf32>
    %cst_18 = arith.constant dense<0.000000e+00> : vector<2x8xf32>
    %45 = vector.multi_reduction <add>, %44, %cst_18 [2] : vector<2x8x8xf32> to vector<2x8xf32>
    %46 = vector.shape_cast %45 : vector<2x8xf32> to vector<2x8x1xf32>
    %47 = vector.broadcast %46 : vector<2x8x1xf32> to vector<2x8x8xf32>
    %48 = arith.divf %44, %47 : vector<2x8x8xf32>
    "tpu.trace_start"() <{level = 10 : i32, message = "bls,bsd->bld"}> : () -> ()
    %cst_19 = arith.constant dense<0.000000e+00> : vector<2x8x32xf32>
    %49 = tpu.matmul %48, %38, %cst_19 {dimension_numbers = #tpu.dot_dimension_numbers<[2], [1], [1], [2], [0, 0, 0, 1, 1, 2], [0], [0]>} : vector<2x8x8xf32>, vector<2x8x32xf32>, vector<2x8x32xf32> -> vector<2x8x32xf32>
    "tpu.trace_stop"() : () -> ()
    %50 = arith.addf %32, %49 : vector<2x8x32xf32>
    %51 = vector.extract_strided_slice %13 {offsets = [0, 16], sizes = [16, 8], strides = [1, 1]} : vector<16x32xf32> to vector<16x8xf32>
    %52 = vector.shape_cast %51 : vector<16x8xf32> to vector<2x8x8xf32>
    %53 = vector.extract_strided_slice %14 {offsets = [0, 16], sizes = [16, 8], strides = [1, 1]} : vector<16x32xf32> to vector<16x8xf32>
    %54 = vector.shape_cast %53 : vector<16x8xf32> to vector<2x8x8xf32>
    %55 = vector.extract_strided_slice %15 {offsets = [0, 64], sizes = [16, 32], strides = [1, 1]} : vector<16x128xf32> to vector<16x32xf32>
    %56 = vector.shape_cast %55 : vector<16x32xf32> to vector<2x8x32xf32>
    "tpu.trace_start"() <{level = 10 : i32, message = "ble,bse->bls"}> : () -> ()
    %cst_20 = arith.constant dense<0.000000e+00> : vector<2x8x8xf32>
    %57 = tpu.matmul %52, %54, %cst_20 {dimension_numbers = #tpu.dot_dimension_numbers<[2], [2], [1], [1], [0, 0, 0, 1, 1, 1], [0], [0]>} : vector<2x8x8xf32>, vector<2x8x8xf32>, vector<2x8x8xf32> -> vector<2x8x8xf32>
    "tpu.trace_stop"() : () -> ()
    %cst_21 = arith.constant dense<0xFF800000> : vector<2x8xf32>
    %58 = vector.multi_reduction <maximumf>, %57, %cst_21 [2] : vector<2x8x8xf32> to vector<2x8xf32>
    %59 = vector.shape_cast %58 : vector<2x8xf32> to vector<2x8x1xf32>
    %60 = vector.broadcast %59 : vector<2x8x1xf32> to vector<2x8x8xf32>
    %61 = arith.subf %57, %60 : vector<2x8x8xf32>
    %62 = math.exp %61 : vector<2x8x8xf32>
    %cst_22 = arith.constant dense<0.000000e+00> : vector<2x8xf32>
    %63 = vector.multi_reduction <add>, %62, %cst_22 [2] : vector<2x8x8xf32> to vector<2x8xf32>
    %64 = vector.shape_cast %63 : vector<2x8xf32> to vector<2x8x1xf32>
    %65 = vector.broadcast %64 : vector<2x8x1xf32> to vector<2x8x8xf32>
    %66 = arith.divf %62, %65 : vector<2x8x8xf32>
    "tpu.trace_start"() <{level = 10 : i32, message = "bls,bsd->bld"}> : () -> ()
    %cst_23 = arith.constant dense<0.000000e+00> : vector<2x8x32xf32>
    %67 = tpu.matmul %66, %56, %cst_23 {dimension_numbers = #tpu.dot_dimension_numbers<[2], [1], [1], [2], [0, 0, 0, 1, 1, 2], [0], [0]>} : vector<2x8x8xf32>, vector<2x8x32xf32>, vector<2x8x32xf32> -> vector<2x8x32xf32>
    "tpu.trace_stop"() : () -> ()
    %68 = arith.addf %50, %67 : vector<2x8x32xf32>
    %69 = vector.extract_strided_slice %13 {offsets = [0, 24], sizes = [16, 8], strides = [1, 1]} : vector<16x32xf32> to vector<16x8xf32>
    %70 = vector.shape_cast %69 : vector<16x8xf32> to vector<2x8x8xf32>
    %71 = vector.extract_strided_slice %14 {offsets = [0, 24], sizes = [16, 8], strides = [1, 1]} : vector<16x32xf32> to vector<16x8xf32>
    %72 = vector.shape_cast %71 : vector<16x8xf32> to vector<2x8x8xf32>
    %73 = vector.extract_strided_slice %15 {offsets = [0, 96], sizes = [16, 32], strides = [1, 1]} : vector<16x128xf32> to vector<16x32xf32>
    %74 = vector.shape_cast %73 : vector<16x32xf32> to vector<2x8x32xf32>
    "tpu.trace_start"() <{level = 10 : i32, message = "ble,bse->bls"}> : () -> ()
    %cst_24 = arith.constant dense<0.000000e+00> : vector<2x8x8xf32>
    %75 = tpu.matmul %70, %72, %cst_24 {dimension_numbers = #tpu.dot_dimension_numbers<[2], [2], [1], [1], [0, 0, 0, 1, 1, 1], [0], [0]>} : vector<2x8x8xf32>, vector<2x8x8xf32>, vector<2x8x8xf32> -> vector<2x8x8xf32>
    "tpu.trace_stop"() : () -> ()
    %cst_25 = arith.constant dense<0xFF800000> : vector<2x8xf32>
    %76 = vector.multi_reduction <maximumf>, %75, %cst_25 [2] : vector<2x8x8xf32> to vector<2x8xf32>
    %77 = vector.shape_cast %76 : vector<2x8xf32> to vector<2x8x1xf32>
    %78 = vector.broadcast %77 : vector<2x8x1xf32> to vector<2x8x8xf32>
    %79 = arith.subf %75, %78 : vector<2x8x8xf32>
    %80 = math.exp %79 : vector<2x8x8xf32>
    %cst_26 = arith.constant dense<0.000000e+00> : vector<2x8xf32>
    %81 = vector.multi_reduction <add>, %80, %cst_26 [2] : vector<2x8x8xf32> to vector<2x8xf32>
    %82 = vector.shape_cast %81 : vector<2x8xf32> to vector<2x8x1xf32>
    %83 = vector.broadcast %82 : vector<2x8x1xf32> to vector<2x8x8xf32>
    %84 = arith.divf %80, %83 : vector<2x8x8xf32>
    "tpu.trace_start"() <{level = 10 : i32, message = "bls,bsd->bld"}> : () -> ()
    %cst_27 = arith.constant dense<0.000000e+00> : vector<2x8x32xf32>
    %85 = tpu.matmul %84, %74, %cst_27 {dimension_numbers = #tpu.dot_dimension_numbers<[2], [1], [1], [2], [0, 0, 0, 1, 1, 2], [0], [0]>} : vector<2x8x8xf32>, vector<2x8x32xf32>, vector<2x8x32xf32> -> vector<2x8x32xf32>
    "tpu.trace_stop"() : () -> ()
    %86 = arith.addf %68, %85 : vector<2x8x32xf32>
    %87 = vector.shape_cast %86 : vector<2x8x32xf32> to vector<16x32xf32>
    %88 = vector.broadcast %2 : vector<1x32xf32> to vector<16x32xf32>
    %89 = arith.addf %87, %88 : vector<16x32xf32>
    %90 = arith.addf %0, %89 : vector<16x32xf32>
    %cst_28 = arith.constant dense<0.000000e+00> : vector<16xf32>
    %91 = vector.multi_reduction <add>, %90, %cst_28 [1] : vector<16x32xf32> to vector<16xf32>
    %92 = vector.shape_cast %91 : vector<16xf32> to vector<16x1xf32>
    %cst_29 = arith.constant 3.200000e+01 : f32
    %93 = vector.broadcast %cst_29 : f32 to vector<16x1xf32>
    %94 = arith.divf %92, %93 : vector<16x1xf32>
    %95 = vector.broadcast %94 : vector<16x1xf32> to vector<16x32xf32>
    %96 = arith.subf %90, %95 : vector<16x32xf32>
    %97 = arith.mulf %96, %96 : vector<16x32xf32>
    %cst_30 = arith.constant dense<0.000000e+00> : vector<16xf32>
    %98 = vector.multi_reduction <add>, %97, %cst_30 [1] : vector<16x32xf32> to vector<16xf32>
    %99 = vector.shape_cast %98 : vector<16xf32> to vector<16x1xf32>
    %cst_31 = arith.constant 3.200000e+01 : f32
    %100 = vector.broadcast %cst_31 : f32 to vector<16x1xf32>
    %101 = arith.divf %99, %100 : vector<16x1xf32>
    %102 = vector.broadcast %94 : vector<16x1xf32> to vector<16x32xf32>
    %103 = arith.subf %90, %102 : vector<16x32xf32>
    %cst_32 = arith.constant 9.99999974E-6 : f32
    %104 = vector.broadcast %cst_32 : f32 to vector<16x1xf32>
    %105 = arith.addf %101, %104 : vector<16x1xf32>
    %106 = math.rsqrt %105 : vector<16x1xf32>
    %107 = vector.broadcast %106 : vector<16x1xf32> to vector<16x32xf32>
    %108 = arith.mulf %103, %107 : vector<16x32xf32>
    %109 = vector.broadcast %5 : vector<1x32xf32> to vector<16x32xf32>
    %110 = arith.mulf %108, %109 : vector<16x32xf32>
    %111 = vector.broadcast %6 : vector<1x32xf32> to vector<16x32xf32>
    %112 = arith.addf %110, %111 : vector<16x32xf32>
    %c0_33 = arith.constant 0 : index
    %c0_34 = arith.constant 0 : index
    %113 = vector.load %arg3[%c0_33, %c0_34] : memref<32x128xf32, #tpu.memory_space<vmem>>, vector<32x128xf32>
    %cst_35 = arith.constant dense<0.000000e+00> : vector<16x128xf32>
    %114 = tpu.matmul %112, %113, %cst_35 {dimension_numbers = #tpu.dot_dimension_numbers<[1], [0], [0], [1], [0, 0, 1, 1], [], []>} : vector<16x32xf32>, vector<32x128xf32>, vector<16x128xf32> -> vector<16x128xf32>
    %115 = vector.broadcast %3 : vector<1x128xf32> to vector<16x128xf32>
    %116 = arith.addf %114, %115 : vector<16x128xf32>
    %cst_36 = arith.constant 0.000000e+00 : f32
    %117 = vector.broadcast %cst_36 : f32 to vector<16x128xf32>
    %118 = arith.maximumf %116, %117 : vector<16x128xf32>
    %c0_37 = arith.constant 0 : index
    %c0_38 = arith.constant 0 : index
    %119 = vector.load %arg4[%c0_37, %c0_38] : memref<128x32xf32, #tpu.memory_space<vmem>>, vector<128x32xf32>
    %cst_39 = arith.constant dense<0.000000e+00> : vector<16x32xf32>
    %120 = tpu.matmul %118, %119, %cst_39 {dimension_numbers = #tpu.dot_dimension_numbers<[1], [0], [0], [1], [0, 0, 1, 1], [], []>} : vector<16x128xf32>, vector<128x32xf32>, vector<16x32xf32> -> vector<16x32xf32>
    %121 = vector.broadcast %4 : vector<1x32xf32> to vector<16x32xf32>
    %122 = arith.addf %120, %121 : vector<16x32xf32>
    %123 = arith.addf %112, %122 : vector<16x32xf32>
    %cst_40 = arith.constant dense<0.000000e+00> : vector<16xf32>
    %124 = vector.multi_reduction <add>, %123, %cst_40 [1] : vector<16x32xf32> to vector<16xf32>
    %125 = vector.shape_cast %124 : vector<16xf32> to vector<16x1xf32>
    %cst_41 = arith.constant 3.200000e+01 : f32
    %126 = vector.broadcast %cst_41 : f32 to vector<16x1xf32>
    %127 = arith.divf %125, %126 : vector<16x1xf32>
    %128 = vector.broadcast %127 : vector<16x1xf32> to vector<16x32xf32>
    %129 = arith.subf %123, %128 : vector<16x32xf32>
    %130 = arith.mulf %129, %129 : vector<16x32xf32>
    %cst_42 = arith.constant dense<0.000000e+00> : vector<16xf32>
    %131 = vector.multi_reduction <add>, %130, %cst_42 [1] : vector<16x32xf32> to vector<16xf32>
    %132 = vector.shape_cast %131 : vector<16xf32> to vector<16x1xf32>
    %cst_43 = arith.constant 3.200000e+01 : f32
    %133 = vector.broadcast %cst_43 : f32 to vector<16x1xf32>
    %134 = arith.divf %132, %133 : vector<16x1xf32>
    %135 = vector.broadcast %127 : vector<16x1xf32> to vector<16x32xf32>
    %136 = arith.subf %123, %135 : vector<16x32xf32>
    %cst_44 = arith.constant 9.99999974E-6 : f32
    %137 = vector.broadcast %cst_44 : f32 to vector<16x1xf32>
    %138 = arith.addf %134, %137 : vector<16x1xf32>
    %139 = math.rsqrt %138 : vector<16x1xf32>
    %140 = vector.broadcast %139 : vector<16x1xf32> to vector<16x32xf32>
    %141 = arith.mulf %136, %140 : vector<16x32xf32>
    %142 = vector.broadcast %7 : vector<1x32xf32> to vector<16x32xf32>
    %143 = arith.mulf %141, %142 : vector<16x32xf32>
    %144 = vector.broadcast %8 : vector<1x32xf32> to vector<16x32xf32>
    %145 = arith.addf %143, %144 : vector<16x32xf32>
    %c0_45 = arith.constant 0 : index
    %c0_46 = arith.constant 0 : index
    %146 = vector.load %arg6[%c0_45, %c0_46] : memref<16x32xf32, #tpu.memory_space<vmem>>, vector<16x32xf32>
    tpu.vector_store %arg6[%c0_45, %c0_46], %145 {strides = array<i32>} : memref<16x32xf32, #tpu.memory_space<vmem>>, vector<16x32xf32>,
    return
  }
  func.func @transform_0(%arg0: i32) -> (i32, i32) {
    %c0_i32 = arith.constant 0 : i32
    %c0_i32_0 = arith.constant 0 : i32
    %c0_i32_1 = arith.constant 0 : i32
    return %c0_i32, %c0_i32_0 : i32, i32
  }
  func.func @transform_1(%arg0: i32) -> (i32, i32) {
    %c0_i32 = arith.constant 0 : i32
    %c0_i32_0 = arith.constant 0 : i32
    %c0_i32_1 = arith.constant 0 : i32
    return %c0_i32, %c0_i32_0 : i32, i32
  }
  func.func @transform_2(%arg0: i32) -> (i32, i32) {
    %c0_i32 = arith.constant 0 : i32
    %c0_i32_0 = arith.constant 0 : i32
    %c0_i32_1 = arith.constant 0 : i32
    return %c0_i32, %c0_i32_0 : i32, i32
  }
  func.func @transform_3(%arg0: i32) -> (i32, i32) {
    %c0_i32 = arith.constant 0 : i32
    %c0_i32_0 = arith.constant 0 : i32
    %c0_i32_1 = arith.constant 0 : i32
    return %c0_i32, %c0_i32_0 : i32, i32
  }
  func.func @transform_4(%arg0: i32) -> (i32, i32) {
    %c0_i32 = arith.constant 0 : i32
    %c0_i32_0 = arith.constant 0 : i32
    %c0_i32_1 = arith.constant 0 : i32
    return %c0_i32, %c0_i32_0 : i32, i32
  }
  func.func @transform_5(%arg0: i32) -> (i32, i32) {
    %c0_i32 = arith.constant 0 : i32
    %c0_i32_0 = arith.constant 0 : i32
    %c0_i32_1 = arith.constant 0 : i32
    return %c0_i32, %c0_i32_0 : i32, i32
  }
}

</mosaic_0001>

<bundles_post_ra>
// kernel: encoder_layer.1
= control target key start
LH: loop header
LB: loop body
LE: loop exit
PB: predicated region body
PF: predicated region fallthrough
CT: control target
= control target key end

     0   :  { %s1389_s0 = inlined_call_operand.vmem [shape: f32[16,32], index: 0, kind: input, shape index: {}]   ;;  %s1390_s1 = inlined_call_operand.vmem [shape: f32[32,192], index: 1, kind: input, shape index: {}]   ;;  %s1391_s2 = inlined_call_operand.vmem [shape: f32[32,128], index: 2, kind: input, shape index: {}]   ;;  %s1392_s3 = inlined_call_operand.vmem [shape: f32[128,32], index: 3, kind: input, shape index: {}]   ;;  %s1393_s4 = inlined_call_operand.vmem [shape: f32[8,256], index: 4, kind: input, shape index: {}]   ;;  %s1394_s5 = inlined_call_operand.hbm [shape: f32[16,32], index: 5, kind: output, shape index: {}]  }
   0x1   :  { %v37_v0 = vld [vmem:[%s1390_s1 + $0x30] sm:$0xff]  ;;  %v35_v1 = vld [vmem:[%s1390_s1 + $0x20] sm:$0xff] }
   0x2   :  { %63 = vmatpush.msra.mxu0 %v37_v0  ;;  %v33_v2 = vld [vmem:[%s1390_s1 + $0x10] sm:$0xff] }
   0x3   :  { %10 = vsyncpa [#allocation3], 0  ;;  %v31_v3 = vld [vmem:[%s1390_s1] sm:$0xff]  ;;  %vm44_vm0 = vcmask 261120   ;;  %v1099_v5 = vld [vmem:[%s1389_s0 + $0x8] sm:$0xff]  ;;  %s1034_s7 = smov 120  }
   0x4   :  { %64 = vmatpush.msra.mxu0 %v35_v1  ;;  %v1092_v4 = vld [vmem:[%s1389_s0] sm:$0xff]  ;;  %s1035_s8 = smov 96   ;;  %s1036_s0 = smov 88   ;;  %vm100_vm1 = vcmask 64512   ;;  %v38_v16 = vld [vmem:[%s1390_s1 + $0x38] sm:$0xff]  ;;  %v36_v17 = vld [vmem:[%s1390_s1 + $0x28] sm:$0xff] }
   0x5   :  { %v1106_v6 = vld [vmem:[%s1393_s4] ss:$8 sm:$0x3]  ;;  %s1037_s9 = smov 112   ;;  %s1038_s10 = smov 32   ;;  %86 = vmatpush.msra.mxu1 %v38_v16  ;;  %v34_v18 = vld [vmem:[%s1390_s1 + $0x18] sm:$0xff] }
   0x6   :  { %65 = vmatpush.msra.mxu0 %v33_v2  ;;  %v40_v7 = vperm.slane %v1106_v6, 0  ;;  %s1039_s11 = smov 80   ;;  %s1040_s12 = smov 72   ;;  %v32_v19 = vld [vmem:[%s1390_s1 + $0x8] sm:$0xff]  ;;  %v41_v28 = vperm.slane %v1106_v6, 1 }
   0x7   :  { %87 = vmatpush.msra.mxu1 %v36_v17  ;;  %s1041_s1 = smov 104   ;;  %s1042_s21 = smov 64  }
   0x8   :  { %66 = vmatpush.msra.mxu0 %v31_v3  ;;  %s1044_s20 = smov [#allocation2]   ;;  %s911_s22 = sshll.u32 %s1394_s5, 4  ;;  %s912_s22 = int_to_ptr.hbm [resolvable:$true] %s911_s22 }
   0x9   :  { %923 = vmatmul.msk.f32.vlgmr.msra.gmra.mxu0 %vm44_vm0, %v1092_v4  ;;  %88 = vmatpush.msra.mxu1 %v34_v18  ;;  %s1045_s23 = smov 128   ;;  %s1046_s24 = smov 8  }
   0xb   :  { %89 = vmatpush.msra.mxu1 %v32_v19 }
   0xc   :  { %925 = vmatmul.msk.f32.vlgmr.msra.gmra.mxu1 %vm44_vm0, %v1092_v4 }
  0x11   :  { %924 = vmatmul.msk.f32.gmra.mxu0 %vm44_vm0, %v1099_v5 }
  0x14   :  { %926 = vmatmul.msk.f32.gmra.mxu1 %vm44_vm0, %v1099_v5 }
  0x86   :  { %v68_v8 = vpop.f32.mrf.mxu0 }
  0x87   :  { %v1109_v9 = vadd.f32 %v68_v8, %v40_v7 }
  0x89   :  { %200 = vrot.lane.b32.xlu1 %v1109_v9, %s1034_s7  ;;  %98 = vrot.lane.b32.xlu0 %v1109_v9, %s1035_s8  ;;  %v1159_v27 = vpop.f32.mrf.mxu1 }
  0x8e   :  { %v71_v10 = vpop.f32.mrf.mxu0 }
  0x8f   :  { %v1114_v11 = vadd.f32 %v71_v10, %v40_v7 }
  0x91   :  { %230 = vrot.lane.b32.xlu2 %v1114_v11, %s1036_s0  ;;  %202 = vrot.lane.b32.xlu0 %v1109_v9, %s1036_s0  ;;  %v94_v29 = vpop.f32.mrf.mxu1 }
  0x92   :  { %v1164_v30 = vadd.f32 %v94_v29, %v41_v28 }
  0x99   :  { %408 = vrot.lane.b32.xlu2 %v1109_v9, %s1037_s9  ;;  %228 = vrot.lane.b32.xlu0 %v1114_v11, %s1034_s7 }
  0xa1   :  { %304 = vrot.lane.b32.xlu0 %v1109_v9, %s1038_s10  ;;  %438 = vrot.lane.b32.xlu2 %v1114_v11, %s1039_s11 }
  0xa9   :  { %410 = vrot.lane.b32.xlu0 %v1109_v9, %s1039_s11 }
  0xb1   :  { %126 = vrot.lane.b32.xlu0 %v1114_v11, %s1035_s8 }
  0xb9   :  { %562 = vrot.lane.b32.xlu0 %v1109_v9, %s1040_s12 }
  0xc1   :  { %590 = vrot.lane.b32.xlu0 %v1114_v11, %s1040_s12 }
  0xeb   :  { %v231_v20 = vpop.permute.xlu2 %230 }
  0xec   :  { %933 = vmatpush.xpose.msk.msrb.mxu1 %vm100_vm1, %v231_v20 }
  0xf3   :  { %v409_v38 = vpop.permute.xlu2 %408 }
  0xfb   :  { %v99_v12 = vpop.permute.xlu0 %98  ;;  %v201_v14 = vpop.permute.xlu1 %200 }
  0xfc   :  { %927 = vmatpush.xpose.msk.msra.mxu2 %vm100_vm1, %v99_v12  ;;  %v439_v42 = vpop.permute.xlu2 %438 }
  0xfd   :  { %941 = vmatpush.xpose.msk.msra.mxu3 %vm100_vm1, %v439_v42 }
  0xff   :  { %928 = vmatmul.msk.f32.vlgmr.msra.gmra.mxu2 %vm100_vm1, %v1109_v9 }
 0x103   :  { %v203_v13 = vpop.permute.xlu0 %202 }
 0x104   :  { %931 = vmatpush.xpose.msk.msrb.mxu2 %vm100_vm1, %v203_v13 }
 0x107   :  { %932 = vmatmul.msk.f32.vlgmr.msrb.gmra.mxu2 %vm100_vm1, %v201_v14 }
 0x10b   :  { %v229_v15 = vpop.permute.xlu0 %228 }
 0x10c   :  { %934 = vmatmul.msk.f32.vlgmr.msrb.gmra.mxu1 %vm100_vm1, %v229_v15 }
 0x113   :  { %v305_v21 = vpop.permute.xlu0 %304 }
 0x114   :  { %325 = vmatpush.msra.mxu2 %v305_v21 }
 0x11b   :  { %v411_v22 = vpop.permute.xlu0 %410 }
 0x11c   :  { %939 = vmatpush.xpose.msk.msrb.mxu2 %vm100_vm1, %v411_v22 }
 0x123   :  { %v127_v23 = vpop.permute.xlu0 %126 }
 0x124   :  { %929 = vmatpush.xpose.msk.msrb.mxu0 %vm100_vm1, %v127_v23 }
 0x127   :  { %930 = vmatmul.msk.f32.vlgmr.msrb.gmra.mxu0 %vm100_vm1, %v1114_v11 }
 0x12b   :  { %v563_v39 = vpop.permute.xlu0 %562 }
 0x133   :  { %v591_v43 = vpop.permute.xlu0 %590 }
 0x134   :  { %947 = vmatpush.xpose.msk.msrb.mxu3 %vm100_vm1, %v591_v43 }
 0x182   :  { %v1156_v24 = vpop.f32.mrf.mxu2 }
 0x183   :  { %v152_v49 = vsel %vm100_vm1, %v1156_v24, -inf }
 0x189   :  { %v253_v31 = vpop.f32.mrf.mxu1 }
 0x18a   :  { %v225_v25 = vpop.f32.mrf.mxu2  ;;  %v259_v32 = vsel %vm100_vm1, %v253_v31, -inf }
 0x18b   :  { %v256_v26 = vsel %vm100_vm1, %v225_v25, -inf  ;;  %260 = vmax.xlane.f32.xlu0 %v259_v32 }
 0x18c   :  { %257 = vmax.xlane.f32.xlu1 %v256_v26 }
 0x1a4   :  { %v149_v33 = vpop.f32.mrf.mxu0 }
 0x1a5   :  { %560 = vrot.lane.b32.xlu1 %v1109_v9, %s1041_s1  ;;  %v155_v34 = vsel %vm100_vm1, %v149_v33, -inf }
 0x1cf   :  { %156 = vmax.xlane.f32.xlu1 %v155_v34 }
 0x1fe   :  { %v261_v44 = vpop.xlane.xlu0 %260 }
 0x1ff   :  { %v258_v35 = vpop.xlane.xlu1 %257  ;;  %v263_v45 = vsub.f32 %v253_v31, %v261_v44 }
 0x200   :  { %v262_v36 = vsub.f32 %v225_v25, %v258_v35 }
 0x201   :  { %v266_v46 = vmul.f32 1.442695, %v263_v45 }
 0x202   :  { %v264_v37 = vmul.f32 1.442695, %v262_v36 }
 0x204   :  { %966 = vpow2.f32 %v264_v37 }
 0x205   :  { %968 = vpow2.f32 %v266_v46 }
 0x20a   :  { %v967_v40 = vpop.eup %966 }
 0x20b   :  { %v268_v41 = vsel %vm100_vm1, %v967_v40, 0.0  ;;  %v1172_v47 = vpop.eup %968 }
 0x20c   :  { %269 = vadd.xlane.f32.xlu2 %v268_v41  ;;  %v271_v48 = vsel %vm100_vm1, %v1172_v47, 0.0 }
 0x20d   :  { %272 = vadd.xlane.f32.xlu1 %v271_v48 }
 0x217   :  { %v561_v0 = vpop.permute.xlu1 %560 }
 0x224   :  { %436 = vrot.lane.b32.xlu2 %v1114_v11, %s1037_s9 }
 0x22c   :  { %588 = vrot.lane.b32.xlu2 %v1114_v11, %s1041_s1  ;;  %s909_s1 = sshll.u32 %s1044_s20, 4  ;;  %s910_s1 = int_to_ptr.vmem [resolvable:$true] %s909_s1 }
 0x242   :  { %v157_v1 = vpop.xlane.xlu1 %156 }
 0x243   :  { %v159_v2 = vsub.f32 %v149_v33, %v157_v1 }
 0x245   :  { %v162_v8 = vmul.f32 1.442695, %v159_v2 }
 0x255   :  { %153 = vmax.xlane.f32.xlu2 %v152_v49 }
 0x27f   :  { %v270_v50 = vpop.xlane.xlu2 %269 }
 0x280   :  { %970 = vrcp.f32 %v270_v50  ;;  %v285_v55 = vand.u32 2147483648, %v270_v50  ;;  %v283_v57 = vand.u32 2147483647, %v270_v50  ;;  %vm279_vm3 = vweird.f32 %v270_v50  ;;  %v273_v33 = vpop.xlane.xlu1 %272 }
 0x281   :  { %972 = vpow2.f32 %v162_v8  ;;  %vm294_vm6 = vweird.f32 %v273_v33 }
 0x282   :  { %v286_v59 = vor.u32 1.1754944e-38, %v285_v55  ;;  %vm284_vm5 = vcmp.eq.f32.partialorder %v283_v57, 8.507059e+37 }
 0x286   :  { %v971_v51 = vpop.eup %970 }
 0x287   :  { %v275_v52 = vmul.f32 %v971_v51, %v270_v50  ;;  %v437_v53 = vpop.permute.xlu2 %436  ;;  %vm280_vm2 = vweird.f32 %v971_v51  ;;  %v1191_v14 = vpop.eup %972  ;;  %v300_v50 = vand.u32 2147483648, %v273_v33 }
 0x288   :  { %942 = vmatmul.msk.f32.vlgmr.msra.gmra.mxu3 %vm100_vm1, %v437_v53  ;;  %vm281_vm4 = vmor %vm279_vm3, %vm280_vm2  ;;  %v167_v16 = vsel %vm100_vm1, %v1191_v14, 0.0 }
 0x289   :  { %v276_v54 = vsub.f32 1.0, %v275_v52  ;;  %v298_v52 = vand.u32 2147483647, %v273_v33 }
 0x28b   :  { %v277_v56 = vmul.f32 %v971_v51, %v276_v54  ;;  %v301_v54 = vor.u32 1.1754944e-38, %v300_v50  ;;  %vm299_vm9 = vcmp.eq.f32.partialorder %v298_v52, 8.507059e+37 }
 0x28d   :  { %v278_v58 = vadd.f32 %v971_v51, %v277_v56 }
 0x28f   :  { %v282_v60 = vsel %vm281_vm4, %v971_v51, %v278_v58  ;;  %v589_v61 = vpop.permute.xlu2 %588 }
 0x290   :  { %v287_v62 = vsel %vm284_vm5, %v286_v59, %v282_v60  ;;  %948 = vmatmul.msk.f32.vlgmr.msrb.gmra.mxu3 %vm100_vm1, %v589_v61 }
 0x291   :  { %v288_v63 = vmul.f32 %v967_v40, %v287_v62 }
 0x293   :  { %935 = vmatmul.msk.f32.vlgmr.msra.gmra.mxu2 %vm100_vm1, %v288_v63 }
 0x294   :  { %945 = vmatpush.xpose.msk.msra.mxu2 %vm100_vm1, %v563_v39 }
 0x29b   :  { %940 = vmatmul.msk.f32.vlgmr.msrb.gmra.mxu2 %vm100_vm1, %v409_v38 }
 0x2a3   :  { %946 = vmatmul.msk.f32.vlgmr.msra.gmra.mxu2 %vm100_vm1, %v561_v0 }
 0x2c8   :  { %v154_v15 = vpop.xlane.xlu2 %153 }
 0x2c9   :  { %v158_v17 = vsub.f32 %v1156_v24, %v154_v15  ;;  %v1207_v24 = vadd.f32 %v1159_v27, %v41_v28 }
 0x2cb   :  { %v160_v20 = vmul.f32 1.442695, %v158_v17 }
 0x2cd   :  { %974 = vpow2.f32 %v160_v20 }
 0x2d3   :  { %v1198_v23 = vpop.eup %974 }
 0x2d4   :  { %v164_v25 = vsel %vm100_vm1, %v1198_v23, 0.0 }
 0x30b   :  { %v461_v3 = vpop.f32.mrf.mxu3 }
 0x30c   :  { %v467_v7 = vsel %vm100_vm1, %v461_v3, -inf }
 0x30d   :  { %468 = vmax.xlane.f32.xlu0 %v467_v7 }
 0x313   :  { %v613_v10 = vpop.f32.mrf.mxu3 }
 0x314   :  { %v619_v12 = vsel %vm100_vm1, %v613_v10, -inf }
 0x315   :  { %620 = vmax.xlane.f32.xlu0 %v619_v12 }
 0x316   :  { %v1189_v13 = vpop.f32.mrf.mxu2 }
 0x31d   :  { %168 = vadd.xlane.f32.xlu0 %v167_v16 }
 0x31e   :  { %v433_v18 = vpop.f32.mrf.mxu2 }
 0x31f   :  { %v464_v19 = vsel %vm100_vm1, %v433_v18, -inf }
 0x320   :  { %465 = vmax.xlane.f32.xlu2 %v464_v19 }
 0x326   :  { %v585_v21 = vpop.f32.mrf.mxu2 }
 0x327   :  { %v616_v22 = vsel %vm100_vm1, %v585_v21, -inf }
 0x328   :  { %617 = vmax.xlane.f32.xlu2 %v616_v22 }
 0x330   :  { %165 = vadd.xlane.f32.xlu2 %v164_v25 }
 0x348   :  { %330 = vrot.lane.b32.xlu2 %v1114_v11, %s1038_s10 }
 0x350   :  { %665 = vrot.lane.b32.xlu2 %v1207_v24, %s1035_s8 }
 0x380   :  { %v469_v26 = vpop.xlane.xlu0 %468 }
 0x381   :  { %v471_v29 = vsub.f32 %v461_v3, %v469_v26 }
 0x383   :  { %v474_v31 = vmul.f32 1.442695, %v471_v29 }
 0x385   :  { %976 = vpow2.f32 %v474_v31 }
 0x386   :  { %978 = vrcp.f32 %v273_v33 }
 0x388   :  { %v621_v32 = vpop.xlane.xlu0 %620 }
 0x389   :  { %v623_v34 = vsub.f32 %v613_v10, %v621_v32 }
 0x38b   :  { %v1211_v35 = vpop.eup %976  ;;  %v626_v36 = vmul.f32 1.442695, %v623_v34 }
 0x38c   :  { %v479_v6 = vsel %vm100_vm1, %v1211_v35, 0.0  ;;  %v979_v27 = vpop.eup %978 }
 0x38d   :  { %980 = vpow2.f32 %v626_v36  ;;  %480 = vadd.xlane.f32.xlu0 %v479_v6  ;;  %v290_v40 = vmul.f32 %v979_v27, %v273_v33  ;;  %vm295_vm7 = vweird.f32 %v979_v27 }
 0x38e   :  { %vm296_vm8 = vmor %vm294_vm6, %vm295_vm7 }
 0x38f   :  { %v291_v42 = vsub.f32 1.0, %v290_v40 }
 0x390   :  { %v1233_v63 = vpop.xlane.xlu0 %168 }
 0x391   :  { %v292_v45 = vmul.f32 %v979_v27, %v291_v42  ;;  %v196_v50 = vand.u32 2147483648, %v1233_v63 }
 0x393   :  { %v1215_v28 = vpop.eup %980  ;;  %v466_v37 = vpop.xlane.xlu2 %465  ;;  %v293_v51 = vadd.f32 %v979_v27, %v292_v45 }
 0x394   :  { %v470_v38 = vsub.f32 %v433_v18, %v466_v37  ;;  %v631_v39 = vsel %vm100_vm1, %v1215_v28, 0.0 }
 0x395   :  { %632 = vadd.xlane.f32.xlu1 %v631_v39  ;;  %v297_v55 = vsel %vm296_vm8, %v979_v27, %v293_v51  ;;  %vm190_vm8 = vweird.f32 %v1233_v63 }
 0x396   :  { %v472_v41 = vmul.f32 1.442695, %v470_v38  ;;  %v302_v58 = vsel %vm299_vm9, %v301_v54, %v297_v55 }
 0x397   :  { %v303_v60 = vmul.f32 %v1172_v47, %v302_v58 }
 0x398   :  { %982 = vpow2.f32 %v472_v41 }
 0x39b   :  { %v618_v43 = vpop.xlane.xlu2 %617 }
 0x39c   :  { %v622_v44 = vsub.f32 %v585_v21, %v618_v43 }
 0x39e   :  { %v1219_v46 = vpop.eup %982  ;;  %v624_v48 = vmul.f32 1.442695, %v622_v44 }
 0x39f   :  { %v476_v49 = vsel %vm100_vm1, %v1219_v46, 0.0 }
 0x3a0   :  { %984 = vpow2.f32 %v624_v48  ;;  %477 = vadd.xlane.f32.xlu1 %v476_v49 }
 0x3a1   :  { %356 = vrot.lane.b32.xlu0 %v1109_v9, %s1042_s21 }
 0x3a3   :  { %v166_v53 = vpop.xlane.xlu2 %165 }
 0x3a4   :  { %986 = vrcp.f32 %v166_v53  ;;  %v181_v2 = vand.u32 2147483648, %v166_v53  ;;  %vm175_vm11 = vweird.f32 %v166_v53  ;;  %v179_v3 = vand.u32 2147483647, %v166_v53 }
 0x3a5   :  { %988 = vrcp.f32 %v1233_v63 }
 0x3a6   :  { %v1224_v56 = vpop.eup %984  ;;  %v182_v10 = vor.u32 1.1754944e-38, %v181_v2  ;;  %vm180_vm13 = vcmp.eq.f32.partialorder %v179_v3, 8.507059e+37 }
 0x3a7   :  { %v628_v57 = vsel %vm100_vm1, %v1224_v56, 0.0 }
 0x3a8   :  { %629 = vadd.xlane.f32.xlu1 %v628_v57 }
 0x3a9   :  { %692 = vrot.lane.b32.xlu0 %v1164_v30, %s1035_s8 }
 0x3aa   :  { %v987_v9 = vpop.eup %986 }
 0x3ab   :  { %v331_v59 = vpop.permute.xlu2 %330  ;;  %v171_v61 = vmul.f32 %v987_v9, %v166_v53  ;;  %vm176_vm10 = vweird.f32 %v987_v9  ;;  %v989_v18 = vpop.eup %988 }
 0x3ac   :  { %351 = vmatpush.msra.mxu0 %v331_v59  ;;  %vm177_vm12 = vmor %vm175_vm11, %vm176_vm10  ;;  %v186_v22 = vmul.f32 %v989_v18, %v1233_v63  ;;  %vm191_vm5 = vweird.f32 %v989_v18  ;;  %v197_v59 = vor.u32 1.1754944e-38, %v196_v50 }
 0x3ad   :  { %936 = vmatmul.msk.f32.vlgmr.msra.gmra.mxu0 %vm100_vm1, %v303_v60  ;;  %v172_v62 = vsub.f32 1.0, %v171_v61  ;;  %vm192_vm10 = vmor %vm190_vm8, %vm191_vm5 }
 0x3ae   :  { %v187_v32 = vsub.f32 1.0, %v186_v22 }
 0x3af   :  { %v173_v0 = vmul.f32 %v987_v9, %v172_v62 }
 0x3b0   :  { %v188_v37 = vmul.f32 %v989_v18, %v187_v32 }
 0x3b1   :  { %v174_v1 = vadd.f32 %v987_v9, %v173_v0 }
 0x3b2   :  { %v189_v44 = vadd.f32 %v989_v18, %v188_v37 }
 0x3b3   :  { %v178_v8 = vsel %vm177_vm12, %v987_v9, %v174_v1  ;;  %v666_v17 = vpop.permute.xlu2 %665 }
 0x3b4   :  { %v193_v54 = vsel %vm192_vm10, %v989_v18, %v189_v44 }
 0x3c1   :  { %382 = vrot.lane.b32.xlu1 %v1114_v11, %s1042_s21  ;;  %v183_v11 = vsel %vm180_vm13, %v182_v10, %v178_v8 }
 0x3c2   :  { %v184_v16 = vmul.f32 %v1198_v23, %v183_v11 }
 0x400   :  { %v1235_v7 = vpop.xlane.xlu0 %480 }
 0x401   :  { %v508_v62 = vand.u32 2147483648, %v1235_v7  ;;  %vm502_vm13 = vweird.f32 %v1235_v7 }
 0x403   :  { %v509_v3 = vor.u32 1.1754944e-38, %v508_v62 }
 0x408   :  { %v1237_v47 = vpop.xlane.xlu1 %632 }
 0x413   :  { %v478_v12 = vpop.xlane.xlu1 %477  ;;  %v357_v15 = vpop.permute.xlu0 %356 }
 0x414   :  { %990 = vrcp.f32 %v478_v12  ;;  %377 = vmatpush.msrb.mxu0 %v357_v15  ;;  %v493_v26 = vand.u32 2147483648, %v478_v12  ;;  %v491_v29 = vand.u32 2147483647, %v478_v12  ;;  %vm487_vm15 = vweird.f32 %v478_v12 }
 0x415   :  { %937 = vmatmul.msk.f32.vlgmr.msrb.gmra.mxu0 %vm100_vm1, %v184_v16  ;;  %992 = vrcp.f32 %v1235_v7 }
 0x416   :  { %530 = vmatpush.msra.mxu0 %v1207_v24  ;;  %v494_v34 = vor.u32 1.1754944e-38, %v493_v26  ;;  %vm492_vm3 = vcmp.eq.f32.partialorder %v491_v29, 8.507059e+37 }
 0x418   :  { %686 = vmatpush.msrb.mxu0 %v666_v17 }
 0x41a   :  { %v991_v19 = vpop.eup %990 }
 0x41b   :  { %v483_v20 = vmul.f32 %v991_v19, %v478_v12  ;;  %v630_v21 = vpop.xlane.xlu1 %629  ;;  %vm488_vm14 = vweird.f32 %v991_v19  ;;  %v1245_v31 = vpop.eup %992 }
 0x41c   :  { %994 = vrcp.f32 %v630_v21  ;;  %vm489_vm2 = vmor %vm487_vm15, %vm488_vm14  ;;  %v498_v38 = vmul.f32 %v1245_v31, %v1235_v7  ;;  %v645_v41 = vand.u32 2147483648, %v630_v21  ;;  %v643_v43 = vand.u32 2147483647, %v630_v21  ;;  %v693_v8 = vpop.permute.xlu0 %692 }
 0x41d   :  { %v484_v25 = vsub.f32 1.0, %v483_v20  ;;  %996 = vrcp.f32 %v1237_v47  ;;  %vm639_vm6 = vweird.f32 %v630_v21  ;;  %vm503_vm12 = vweird.f32 %v1245_v31 }
 0x41e   :  { %v499_v45 = vsub.f32 1.0, %v498_v38  ;;  %v646_v51 = vor.u32 1.1754944e-38, %v645_v41  ;;  %vm644_vm9 = vcmp.eq.f32.partialorder %v643_v43, 8.507059e+37  ;;  %vm504_vm14 = vmor %vm502_vm13, %vm503_vm12 }
 0x41f   :  { %v485_v23 = vmul.f32 %v991_v19, %v484_v25 }
 0x420   :  { %v500_v55 = vmul.f32 %v1245_v31, %v499_v45 }
 0x421   :  { %v486_v33 = vadd.f32 %v991_v19, %v485_v23 }
 0x422   :  { %v995_v24 = vpop.eup %994  ;;  %v501_v9 = vadd.f32 %v1245_v31, %v500_v55  ;;  %v779_v55 = vld [vmem:[%s1391_s2] sm:$0xff] }
 0x423   :  { %v490_v36 = vsel %vm489_vm2, %v991_v19, %v486_v33  ;;  %v635_v6 = vmul.f32 %v995_v24, %v630_v21  ;;  %vm640_vm4 = vweird.f32 %v995_v24  ;;  %v997_v49 = vpop.eup %996 }
 0x424   :  { %v495_v27 = vsel %vm492_vm3, %v494_v34, %v490_v36  ;;  %vm641_vm7 = vmor %vm639_vm6, %vm640_vm4  ;;  %v650_v57 = vmul.f32 %v997_v49, %v1237_v47  ;;  %vm655_vm2 = vweird.f32 %v997_v49  ;;  %vm654_vm3 = vweird.f32 %v1237_v47 }
 0x425   :  { %v636_v39 = vsub.f32 1.0, %v635_v6  ;;  %v496_v40 = vmul.f32 %v1219_v46, %v495_v27  ;;  %v194_v46 = vand.u32 2147483647, %v1233_v63  ;;  %v506_v63 = vand.u32 2147483647, %v1235_v7  ;;  %vm656_vm4 = vmor %vm654_vm3, %vm655_vm2 }
 0x426   :  { %v651_v61 = vsub.f32 1.0, %v650_v57  ;;  %v660_v7 = vand.u32 2147483648, %v1237_v47  ;;  %v1043_v27 = vmov 32.0  }
 0x427   :  { %v637_v42 = vmul.f32 %v995_v24, %v636_v39  ;;  %943 = vmatmul.msk.f32.vlgmr.msra.gmra.mxu0 %vm100_vm1, %v496_v40  ;;  %vm195_vm11 = vcmp.eq.f32.partialorder %v194_v46, 8.507059e+37  ;;  %vm507_vm15 = vcmp.eq.f32.partialorder %v506_v63, 8.507059e+37  ;;  %998 = vrcp.f32 %v1043_v27  ;;  %v814_v27 = vld [vmem:[%s1392_s3] sm:$0xff] }
 0x428   :  { %v198_v60 = vsel %vm195_vm11, %v197_v59, %v193_v54  ;;  %v652_v2 = vmul.f32 %v997_v49, %v651_v61  ;;  %v661_v16 = vor.u32 1.1754944e-38, %v660_v7  ;;  %v780_v54 = vld [vmem:[%s1391_s2 + $0x8] sm:$0xff] }
 0x429   :  { %v638_v48 = vadd.f32 %v995_v24, %v637_v42  ;;  %v199_v1 = vmul.f32 %v1191_v14, %v198_v60  ;;  %v658_v14 = vand.u32 2147483647, %v1237_v47 }
 0x42a   :  { %v653_v11 = vadd.f32 %v997_v49, %v652_v2  ;;  %v353_v18 = vpop.f32.mrf.mxu0  ;;  %v827_v2 = vld [vmem:[%s1392_s3 + $0x68] sm:$0xff] }
 0x42b   :  { %v642_v52 = vsel %vm641_vm7, %v995_v24, %v638_v48  ;;  %vm659_vm5 = vcmp.eq.f32.partialorder %v658_v14, 8.507059e+37  ;;  %v826_v14 = vld [vmem:[%s1392_s3 + $0x60] sm:$0xff] }
 0x42c   :  { %v647_v53 = vsel %vm644_vm9, %v646_v51, %v642_v52  ;;  %v657_v15 = vsel %vm656_vm4, %v997_v49, %v653_v11  ;;  %v782_v52 = vld [vmem:[%s1391_s2 + $0x18] sm:$0xff] }
 0x42d   :  { %v648_v58 = vmul.f32 %v1224_v56, %v647_v53  ;;  %v505_v56 = vsel %vm504_vm14, %v1245_v31, %v501_v9  ;;  %v999_v37 = vpop.eup %998  ;;  %801 = vmatpush.msrb.mxu2 %v782_v52  ;;  %v781_v53 = vld [vmem:[%s1391_s2 + $0x10] sm:$0xff] }
 0x42e   :  { %v510_v10 = vsel %vm507_vm15, %v509_v3, %v505_v56  ;;  %v731_v38 = vmul.f32 32.0, %v999_v37  ;;  %v27_v3 = vld [vmem:[%s1393_s4 + $0x4] ss:$0 sm:$0xff] }
 0x42f   :  { %949 = vmatmul.msk.f32.vlgmr.msrb.gmra.mxu0 %vm100_vm1, %v648_v58  ;;  %v511_v12 = vmul.f32 %v1211_v35, %v510_v10  ;;  %v24_v35 = vld [vmem:[%s1393_s4 + $0x1] ss:$0 sm:$0xff]  ;;  %802 = vmatpush.msrb.mxu2 %v781_v53 }
 0x431   :  { %803 = vmatpush.msrb.mxu2 %v780_v54 }
 0x433   :  { %v383_v0 = vpop.permute.xlu1 %382  ;;  %804 = vmatpush.msrb.mxu2 %v779_v55 }
 0x434   :  { %403 = vmatpush.msra.mxu1 %v383_v0  ;;  %v829_v0 = vld [vmem:[%s1392_s3 + $0x78] sm:$0xff] }
 0x435   :  { %938 = vmatmul.msk.f32.vlgmr.msra.gmra.mxu1 %vm100_vm1, %v199_v1  ;;  %v828_v1 = vld [vmem:[%s1392_s3 + $0x70] sm:$0xff]  ;;  %830 = vmatpush.msra.mxu3 %v829_v0 }
 0x436   :  { %553 = vmatpush.msrb.mxu1 %v1164_v30  ;;  %v662_v30 = vsel %vm659_vm5, %v661_v16, %v657_v15 }
 0x437   :  { %v663_v17 = vmul.f32 %v1215_v28, %v662_v30  ;;  %831 = vmatpush.msra.mxu3 %v828_v1  ;;  %v825_v30 = vld [vmem:[%s1392_s3 + $0x58] sm:$0xff] }
 0x438   :  { %713 = vmatpush.msra.mxu1 %v693_v8 }
 0x439   :  { %832 = vmatpush.msra.mxu3 %v827_v2 }
 0x43b   :  { %833 = vmatpush.msra.mxu3 %v826_v14 }
 0x43d   :  { %944 = vmatmul.msk.f32.vlgmr.msrb.gmra.mxu1 %vm100_vm1, %v511_v12  ;;  %v28_v12 = vld [vmem:[%s1393_s4 + $0x5] ss:$0 sm:$0xff]  ;;  %834 = vmatpush.msra.mxu3 %v825_v30  ;;  %v30_v30 = vld [vmem:[%s1393_s4 + $0x7] ss:$0 sm:$0xff] }
 0x445   :  { %950 = vmatmul.msk.f32.vlgmr.msra.gmra.mxu1 %vm100_vm1, %v663_v17  ;;  %vm735_vm1 = vweird.f32 %v999_v37 }
 0x492   :  { %v379_v19 = vpop.f32.mrf.mxu0 }
 0x493   :  { %v380_v21 = vadd.f32 %v379_v19, %v1189_v13  ;;  %v823_v19 = vld [vmem:[%s1392_s3 + $0x48] sm:$0xff] }
 0x4a4   :  { %v532_v20 = vpop.f32.mrf.mxu0 }
 0x4a5   :  { %v558_v22 = vadd.f32 %v532_v20, %v380_v21  ;;  %v822_v20 = vld [vmem:[%s1392_s3 + $0x40] sm:$0xff] }
 0x4ac   :  { %v688_v47 = vpop.f32.mrf.mxu0 }
 0x4ad   :  { %v718_v25 = vadd.f32 %v688_v47, %v558_v22  ;;  %v821_v22 = vld [vmem:[%s1392_s3 + $0x38] sm:$0xff]  ;;  %v820_v47 = vld [vmem:[%s1392_s3 + $0x30] sm:$0xff] }
 0x4af   :  { %v720_v26 = vadd.f32 %v718_v25, %v24_v35 }
 0x4b1   :  { %v722_v23 = vadd.f32 %v720_v26, %v1092_v4  ;;  %v732_v4 = vsub.f32 1.0, %v731_v38  ;;  %v819_v26 = vld [vmem:[%s1392_s3 + $0x28] sm:$0xff] }
 0x4b2   :  { %v405_v29 = vpop.f32.mrf.mxu1 }
 0x4b3   :  { %v724_v28 = vsel %vm44_vm0, %v722_v23, 0.0  ;;  %v406_v32 = vadd.f32 %v405_v29, %v353_v18  ;;  %v733_v39 = vmul.f32 %v999_v37, %v732_v4  ;;  %v824_v18 = vld [vmem:[%s1392_s3 + $0x50] sm:$0xff]  ;;  %v818_v29 = vld [vmem:[%s1392_s3 + $0x20] sm:$0xff] }
 0x4b4   :  { %725 = vadd.xlane.f32.xlu2 %v724_v28  ;;  %835 = vmatpush.msra.mxu3 %v824_v18 }
 0x4b5   :  { %v734_v40 = vadd.f32 %v999_v37, %v733_v39 }
 0x4b6   :  { %836 = vmatpush.msra.mxu3 %v823_v19 }
 0x4b7   :  { %v1283_v41 = vsel %vm735_vm1, %v999_v37, %v734_v40  ;;  %v25_v37 = vld [vmem:[%s1393_s4 + $0x2] ss:$0 sm:$0xff] }
 0x4b8   :  { %837 = vmatpush.msra.mxu3 %v822_v20 }
 0x4ba   :  { %v555_v31 = vpop.f32.mrf.mxu1  ;;  %838 = vmatpush.msra.mxu3 %v821_v22 }
 0x4bb   :  { %v559_v33 = vadd.f32 %v555_v31, %v406_v32  ;;  %v817_v31 = vld [vmem:[%s1392_s3 + $0x18] sm:$0xff] }
 0x4bc   :  { %839 = vmatpush.msra.mxu3 %v820_v47 }
 0x4be   :  { %840 = vmatpush.msra.mxu3 %v819_v26 }
 0x4c0   :  { %841 = vmatpush.msra.mxu3 %v818_v29 }
 0x4c2   :  { %v715_v24 = vpop.f32.mrf.mxu1  ;;  %842 = vmatpush.msra.mxu3 %v817_v31 }
 0x4c3   :  { %v719_v34 = vadd.f32 %v715_v24, %v559_v33 }
 0x4c5   :  { %v721_v13 = vadd.f32 %v719_v34, %v24_v35 }
 0x4c7   :  { %v723_v36 = vadd.f32 %v721_v13, %v1099_v5 }
 0x4c9   :  { %v727_v6 = vsel %vm44_vm0, %v723_v36, 0.0 }
 0x4ca   :  { %728 = vadd.xlane.f32.xlu0 %v727_v6  ;;  %v815_v6 = vld [vmem:[%s1392_s3 + $0x8] sm:$0xff] }
 0x527   :  { %v726_v42 = vpop.xlane.xlu2 %725 }
 0x528   :  { %v737_v43 = vmul.f32 %v1283_v41, %v726_v42 }
 0x52a   :  { %v739_v44 = vsub.f32 %v722_v23, %v737_v43 }
 0x52c   :  { %v741_v45 = vmul.f32 %v739_v44, %v739_v44 }
 0x52e   :  { %v743_v5 = vsel %vm44_vm0, %v741_v45, 0.0 }
 0x52f   :  { %744 = vadd.xlane.f32.xlu1 %v743_v5 }
 0x53d   :  { %v729_v48 = vpop.xlane.xlu0 %728 }
 0x53e   :  { %v738_v49 = vmul.f32 %v1283_v41, %v729_v48 }
 0x540   :  { %v1288_v50 = vsub.f32 %v723_v36, %v738_v49  ;;  %v816_v36 = vld [vmem:[%s1392_s3 + $0x10] sm:$0xff] }
 0x541   :  { %843 = vmatpush.msra.mxu3 %v816_v36 }
 0x542   :  { %v742_v51 = vmul.f32 %v1288_v50, %v1288_v50 }
 0x543   :  { %844 = vmatpush.msra.mxu3 %v815_v6 }
 0x544   :  { %v746_v46 = vsel %vm44_vm0, %v742_v51, 0.0 }
 0x545   :  { %747 = vadd.xlane.f32.xlu2 %v746_v46  ;;  %845 = vmatpush.msra.mxu3 %v814_v27 }
 0x5a2   :  { %v745_v57 = vpop.xlane.xlu1 %744 }
 0x5a3   :  { %v749_v58 = vmul.f32 %v745_v57, %v1283_v41 }
 0x5a5   :  { %v751_v59 = vadd.f32 1e-05, %v749_v58 }
 0x5a7   :  { %1000 = vrsqrt.f32 %v751_v59  ;;  %vm759_vm7 = vweird.f32 %v751_v59 }
 0x5ad   :  { %v1001_v60 = vpop.eup %1000 }
 0x5ae   :  { %v754_v9 = vmul.f32 %v1001_v60, %v751_v59  ;;  %vm760_vm6 = vweird.f32 %v1001_v60 }
 0x5af   :  { %vm761_vm8 = vmor %vm759_vm7, %vm760_vm6 }
 0x5b0   :  { %v755_v61 = vmul.f32 %v1001_v60, %v754_v9 }
 0x5b2   :  { %v756_v62 = vmul.f32 0.5, %v755_v61 }
 0x5b4   :  { %v757_v63 = vsub.f32 1.5, %v756_v62 }
 0x5b6   :  { %v758_v56 = vmul.f32 %v1001_v60, %v757_v63 }
 0x5b8   :  { %v762_v8 = vsel %vm761_vm8, %v1001_v60, %v758_v56  ;;  %v748_v10 = vpop.xlane.xlu2 %747 }
 0x5b9   :  { %v773_v11 = vmul.f32 %v762_v8, %v739_v44  ;;  %v750_v7 = vmul.f32 %v748_v10, %v1283_v41  ;;  %v26_v44 = vld [vmem:[%s1393_s4 + $0x3] ss:$0 sm:$0xff] }
 0x5bb   :  { %v775_v15 = vmul.f32 %v773_v11, %v27_v3  ;;  %v752_v16 = vadd.f32 1e-05, %v750_v7  ;;  %v29_v7 = vld [vmem:[%s1393_s4 + $0x6] ss:$0 sm:$0xff] }
 0x5bd   :  { %1002 = vrsqrt.f32 %v752_v16  ;;  %v777_v17 = vadd.f32 %v775_v15, %v28_v12  ;;  %vm769_vm10 = vweird.f32 %v752_v16 }
 0x5bf   :  { %951 = vmatmul.msk.f32.vlgmr.msrb.gmra.mxu2 %vm44_vm0, %v777_v17 }
 0x5c3   :  { %v1003_v21 = vpop.eup %1002 }
 0x5c4   :  { %v764_v35 = vmul.f32 %v1003_v21, %v752_v16  ;;  %vm770_vm9 = vweird.f32 %v1003_v21 }
 0x5c5   :  { %vm771_vm11 = vmor %vm769_vm10, %vm770_vm9 }
 0x5c6   :  { %v765_v25 = vmul.f32 %v1003_v21, %v764_v35 }
 0x5c8   :  { %v766_v23 = vmul.f32 0.5, %v765_v25 }
 0x5ca   :  { %v767_v28 = vsub.f32 1.5, %v766_v23 }
 0x5cc   :  { %v768_v32 = vmul.f32 %v1003_v21, %v767_v28 }
 0x5ce   :  { %v772_v33 = vsel %vm771_vm11, %v1003_v21, %v768_v32 }
 0x5cf   :  { %v774_v24 = vmul.f32 %v772_v33, %v1288_v50 }
 0x5d1   :  { %v776_v34 = vmul.f32 %v774_v24, %v27_v3 }
 0x5d3   :  { %v778_v13 = vadd.f32 %v776_v34, %v28_v12 }
 0x5d5   :  { %952 = vmatmul.msk.f32.gmra.mxu2 %vm44_vm0, %v778_v13 }
 0x642   :  { %v806_v38 = vpop.f32.mrf.mxu2 }
 0x643   :  { %v807_v4 = vadd.f32 %v806_v38, %v25_v37 }
 0x645   :  { %v812_v39 = vmax.f32 %v807_v4, 0.0 }
 0x647   :  { %846 = vmatmul.f32.vlgmr.msra.gmra.mxu3 %v812_v39 }
 0x658   :  { %v809_v40 = vpop.f32.mrf.mxu2 }
 0x659   :  { %v810_v42 = vadd.f32 %v809_v40, %v25_v37 }
 0x65b   :  { %v813_v43 = vmax.f32 %v810_v42, 0.0 }
 0x65d   :  { %849 = vmatmul.f32.gmra.mxu3 %v813_v43 }
 0x6ca   :  { %v847_v45 = vpop.f32.mrf.mxu3 }
 0x6cb   :  { %v848_v5 = vadd.f32 %v847_v45, %v26_v44 }
 0x6cd   :  { %v853_v48 = vadd.f32 %v848_v5, %v777_v17 }
 0x6cf   :  { %v855_v49 = vsel %vm44_vm0, %v853_v48, 0.0 }
 0x6d0   :  { %856 = vadd.xlane.f32.xlu0 %v855_v49 }
 0x6e0   :  { %v850_v50 = vpop.f32.mrf.mxu3 }
 0x6e1   :  { %v851_v51 = vadd.f32 %v850_v50, %v26_v44 }
 0x6e3   :  { %v854_v46 = vadd.f32 %v851_v51, %v778_v13 }
 0x6e5   :  { %v858_v52 = vsel %vm44_vm0, %v854_v46, 0.0 }
 0x6e6   :  { %859 = vadd.xlane.f32.xlu2 %v858_v52 }
 0x743   :  { %v857_v53 = vpop.xlane.xlu0 %856 }
 0x744   :  { %v861_v54 = vmul.f32 %v857_v53, %v1283_v41 }
 0x746   :  { %v863_v55 = vsub.f32 %v853_v48, %v861_v54 }
 0x748   :  { %v865_v57 = vmul.f32 %v863_v55, %v863_v55 }
 0x74a   :  { %v867_v58 = vsel %vm44_vm0, %v865_v57, 0.0 }
 0x74b   :  { %868 = vadd.xlane.f32.xlu0 %v867_v58 }
 0x759   :  { %v860_v59 = vpop.xlane.xlu2 %859 }
 0x75a   :  { %v862_v60 = vmul.f32 %v860_v59, %v1283_v41 }
 0x75c   :  { %v864_v9 = vsub.f32 %v854_v46, %v862_v60 }
 0x75e   :  { %v866_v61 = vmul.f32 %v864_v9, %v864_v9 }
 0x760   :  { %v870_v62 = vsel %vm44_vm0, %v866_v61, 0.0 }
 0x761   :  { %871 = vadd.xlane.f32.xlu1 %v870_v62 }
 0x7be   :  { %v869_v63 = vpop.xlane.xlu0 %868 }
 0x7bf   :  { %v873_v0 = vmul.f32 %v869_v63, %v1283_v41 }
 0x7c1   :  { %v875_v1 = vadd.f32 1e-05, %v873_v0 }
 0x7c3   :  { %1004 = vrsqrt.f32 %v875_v1  ;;  %vm883_vm13 = vweird.f32 %v875_v1 }
 0x7c9   :  { %v1005_v56 = vpop.eup %1004 }
 0x7ca   :  { %v878_v2 = vmul.f32 %v1005_v56, %v875_v1  ;;  %vm884_vm12 = vweird.f32 %v1005_v56 }
 0x7cb   :  { %vm885_vm14 = vmor %vm883_vm13, %vm884_vm12 }
 0x7cc   :  { %v879_v3 = vmul.f32 %v1005_v56, %v878_v2 }
 0x7ce   :  { %v880_v8 = vmul.f32 0.5, %v879_v3 }
 0x7d0   :  { %v881_v10 = vsub.f32 1.5, %v880_v8 }
 0x7d2   :  { %v882_v11 = vmul.f32 %v1005_v56, %v881_v10 }
 0x7d4   :  { %v886_v14 = vsel %vm885_vm14, %v1005_v56, %v882_v11  ;;  %v872_v12 = vpop.xlane.xlu1 %871 }
 0x7d5   :  { %v897_v15 = vmul.f32 %v886_v14, %v863_v55  ;;  %v874_v16 = vmul.f32 %v872_v12, %v1283_v41 }
 0x7d7   :  { %v899_v17 = vmul.f32 %v897_v15, %v29_v7  ;;  %v876_v18 = vadd.f32 1e-05, %v874_v16 }
 0x7d9   :  { %1006 = vrsqrt.f32 %v876_v18  ;;  %v901_v19 = vadd.f32 %v899_v17, %v30_v30  ;;  %vm893_vm2 = vweird.f32 %v876_v18 }
 0x7db   :  { %903 = vst.msk [vmem:[#allocation2] sm:$0xff] %vm44_vm0, %v901_v19 }
 0x7df   :  { %v1007_v20 = vpop.eup %1006 }
 0x7e0   :  { %v888_v21 = vmul.f32 %v1007_v20, %v876_v18  ;;  %vm894_vm15 = vweird.f32 %v1007_v20 }
 0x7e1   :  { %vm895_vm3 = vmor %vm893_vm2, %vm894_vm15 }
 0x7e2   :  { %v889_v22 = vmul.f32 %v1007_v20, %v888_v21 }
 0x7e4   :  { %v890_v35 = vmul.f32 0.5, %v889_v22 }
 0x7e6   :  { %v891_v47 = vsub.f32 1.5, %v890_v35 }
 0x7e8   :  { %v892_v25 = vmul.f32 %v1007_v20, %v891_v47 }
 0x7ea   :  { %v896_v41 = vsel %vm895_vm3, %v1007_v20, %v892_v25 }
 0x7eb   :  { %v898_v26 = vmul.f32 %v896_v41, %v864_v9 }
 0x7ed   :  { %v900_v23 = vmul.f32 %v898_v26, %v29_v7 }
 0x7ef   :  { %v902_v29 = vadd.f32 %v900_v23, %v30_v30 }
 0x7f1   :  { %904 = vst.msk [vmem:[#allocation2 + $0x8] sm:$0xff] %vm44_vm0, %v902_v29 }
 0x7f2   :  { %917 = dma.vmem_to_hbm [thread:$0]  %s910_s1, 256, %s912_s22, [#allocation3], %s1045_s23, %s1045_s23, %s1046_s24  }
 0x7f3   :  { %1032 = dma.done.wait [#allocation3], 256  }
 0x7f4   :  { %1033 = vsyncadd [#allocation3], 4294967040 }
 0x7f5   :  { %922 = vsyncpa [#allocation3], 1 }

</bundles_post_ra>
